<compile_context>
chip_gen: v6e
topology: v6e:2x2x1
jax: 0.10.0
libtpu: 0.0.40
codegen_flags: <defaults>
</compile_context>

<pallas_src>
import functools

import jax
import jax.numpy as jnp
from jax import lax
from jax.experimental import pallas as pl
from jax.experimental.pallas import tpu as pltpu

IGNORE_INDEX = 255
_TARGET_BLOCK_BYTES = 2 << 20      # ~2 MiB of input bytes per grid step


def _round_up(x, m):
    return ((x + m - 1) // m) * m


def _vmem_capacity_bytes():
    """Per-TensorCore VMEM capacity (generation-aware, conservative default)."""
    try:
        cap = int(pltpu.get_tpu_info().vmem_capacity_bytes)
    except Exception:
        cap = 0
    if cap <= 0:
        cap = 64 << 20                       # conservative (v7x per-TC VMEM)
    try:
        kind = jax.devices()[0].device_kind.lower()
        if "v7" in kind or "7x" in kind:     # 64 MiB per TensorCore on v7x
            cap = min(cap, 64 << 20)
    except Exception:
        pass
    return cap


def _num_tensorcores():
    """TensorCores a single Pallas grid can span (megacore / v7x dual-TC)."""
    try:
        kind = jax.devices()[0].device_kind.lower()
    except Exception:
        return 1
    return 2 if any(t in kind for t in ("v7", "7x", "v4", "v5p")) else 1


# --------------------------------- kernels ---------------------------------

def _ce_label_kernel(logits_ref, labels_ref, sum_ref, cnt_ref, *, hw, tile):
    """(C, T) logits + (1, T) integer labels -> lane-dense partial CE sums."""
    i = pl.program_id(2)

    @pl.when(i == 0)
    def _():
        sum_ref[...] = jnp.zeros_like(sum_ref)
        cnt_ref[...] = jnp.zeros_like(cnt_ref)

    x = logits_ref[...]                               # (C, T) native dtype
    lbl = labels_ref[...].astype(jnp.int32)           # (1, T) widened in VMEM

    # one-hot mask built once and reused only for the target gather
    cls = lax.broadcasted_iota(jnp.int32, x.shape, 0)
    onehot = cls == lbl                               # (C, T)

    # class-axis max + target-logit select in the native dtype (bf16 VPU);
    # only the (1, T) results are upcast.  The select-sum is exact: at most one
    # nonzero term per lane.
    m32 = jnp.max(x, axis=0, keepdims=True).astype(jnp.float32)
    tgt = jnp.sum(jnp.where(onehot, x, 0), axis=0,
                  keepdims=True).astype(jnp.float32)

    # f32 only on the exp / log-sum path
    x32 = x.astype(jnp.float32)
    lse = m32 + jnp.log(jnp.sum(jnp.exp(x32 - m32), axis=0, keepdims=True))

    # valid = not ignore_index AND inside the (possibly ragged) pixel extent
    lane = lax.broadcasted_iota(jnp.int32, lbl.shape, 1)
    blk = pl.program_id(1) * pl.num_programs(2) + i
    inb = blk * tile + lane < hw
    valid = (lbl != IGNORE_INDEX) & inb

    per_pixel = jnp.where(valid, lse - tgt, 0.0)      # (1, T)

    sum_ref[...] = sum_ref[...] + per_pixel.reshape(sum_ref.shape)
    cnt_ref[...] = cnt_ref[...] + valid.astype(jnp.int32).reshape(cnt_ref.shape)


def _ce_weighted_kernel(logits_ref, w_ref, sum_ref, cnt_ref, *, hw, tile):
    """(C, T) low-res logits + (C, T) per-class valid-pixel counts.

    Fused nearest-neighbor upsample: each low-res (source) pixel contributes
    nvalid * logsumexp(x) - sum_c w_c * x_c, where w_c counts the non-ignored
    label-resolution pixels in its footprint that carry class c.
    """
    i = pl.program_id(2)

    @pl.when(i == 0)
    def _():
        sum_ref[...] = jnp.zeros_like(sum_ref)
        cnt_ref[...] = jnp.zeros_like(cnt_ref)

    x32 = logits_ref[...].astype(jnp.float32)          # (C, T)
    w = w_ref[...]                                      # (C, T) f32 counts

    m32 = jnp.max(x32, axis=0, keepdims=True)
    lse = m32 + jnp.log(jnp.sum(jnp.exp(x32 - m32), axis=0, keepdims=True))

    nval = jnp.sum(w, axis=0, keepdims=True)            # (1, T)
    wx = jnp.sum(w * x32, axis=0, keepdims=True)        # (1, T)

    lane = lax.broadcasted_iota(jnp.int32, lse.shape, 1)
    blk = pl.program_id(1) * pl.num_programs(2) + i
    inb = blk * tile + lane < hw

    sum_ref[...] = sum_ref[...] + jnp.where(inb, nval * lse - wx,
                                            0.0).reshape(sum_ref.shape)
    cnt_ref[...] = cnt_ref[...] + jnp.where(inb, nval,
                                            0.0).reshape(cnt_ref.shape)


# ------------------------------ pallas runner ------------------------------

def _vmem_estimate(tile, c, in_itemsize, aux_rows, aux_itemsize):
    c_pad = _round_up(c, 8 * max(1, 4 // in_itemsize))
    aux_pad = _round_up(aux_rows, 8 * max(1, 4 // aux_itemsize))
    blocks = c_pad * tile * in_itemsize + aux_pad * tile * aux_itemsize
    accs = 2 * 8 * tile * 4
    temps = 6 * c_pad * tile * 4            # in-kernel f32 temporaries
    return 2 * (blocks + accs) + temps


def _run_ce(kernel, logits, aux, hw_valid, cnt_dtype):
    n, c, hw = logits.shape
    aux_rows = aux.shape[1]
    in_itemsize = jnp.dtype(logits.dtype).itemsize
    aux_itemsize = jnp.dtype(aux.dtype).itemsize
    vmem_cap = _vmem_capacity_bytes()

    # ---- lane-tile sizing: bytes-per-step target, then the VMEM budget ----
    wire_per_lane = c * in_itemsize + aux_rows * aux_itemsize
    tile = _round_up(max(_TARGET_BLOCK_BYTES // max(wire_per_lane, 1), 128), 128)
    tile = max(128, min(tile, (hw // 128) * 128))       # block never exceeds extent
    budget = (vmem_cap * 5) // 8
    while (tile > 128 and
           _vmem_estimate(tile, c, in_itemsize, aux_rows, aux_itemsize) > budget):
        tile = max(128, _round_up(tile // 2, 128))

    nt = -(-hw // tile)                      # pixel tiles (last one may be ragged)
    n_tc = _num_tensorcores()
    # the batch axis already feeds both cores when it divides evenly; only add a
    # shard axis when it would otherwise leave a core idle.
    n_shards = n_tc if (n_tc > 1 and n % n_tc != 0 and nt % n_tc == 0
                        and nt >= 2 * n_tc) else 1
    tps = nt // n_shards
    grid = (n, n_shards, tps)

    est = _vmem_estimate(tile, c, in_itemsize, aux_rows, aux_itemsize)
    vmem_bytes = int(min(max(est + (4 << 20), 16 << 20), (vmem_cap * 3) // 4))

    kern = functools.partial(kernel, hw=hw_valid, tile=tile)
    sums, cnts = pl.pallas_call(
        kern,
        out_shape=(
            jax.ShapeDtypeStruct((n, n_shards, 1, tile), jnp.float32),
            jax.ShapeDtypeStruct((n, n_shards, 1, tile), cnt_dtype),
        ),
        grid_spec=pltpu.PrefetchScalarGridSpec(
            num_scalar_prefetch=0,
            grid=grid,
            in_specs=[
                pl.BlockSpec((pl.Squeezed(), c, tile),
                             lambda b, s, i: (b, 0, s * tps + i)),
                pl.BlockSpec((pl.Squeezed(), aux_rows, tile),
                             lambda b, s, i: (b, 0, s * tps + i)),
            ],
            out_specs=[
                pl.BlockSpec((1, 1, 1, tile), lambda b, s, i: (b, s, 0, 0)),
                pl.BlockSpec((1, 1, 1, tile), lambda b, s, i: (b, s, 0, 0)),
            ],
        ),
        compiler_params=pltpu.CompilerParams(
            dimension_semantics=("parallel", "parallel", "arbitrary"),
            vmem_limit_bytes=vmem_bytes),
    )(logits, aux)

    # tiny final reductions + the mean over non-ignored pixels (reduction='mean').
    return jnp.sum(sums) / jnp.sum(cnts).astype(jnp.float32)


# ------------------------------ path builders ------------------------------

def _ce_from_labels(logits, labels):
    """logits: (N, C, HW) float; labels: (N, 1, HW) integer (255 = ignore)."""
    _, _, hw = logits.shape
    if not jnp.issubdtype(labels.dtype, jnp.integer):
        labels = labels.astype(jnp.int32)
    if hw < 128:                             # tiny inputs only: keep blocks <= array
        pad = 128 - hw
        logits = jnp.pad(logits, ((0, 0), (0, 0), (0, pad)))
        labels = jnp.pad(labels, ((0, 0), (0, 0), (0, pad)),
                         constant_values=IGNORE_INDEX)
    return _run_ce(_ce_label_kernel, logits, labels, hw_valid=hw,
                   cnt_dtype=jnp.int32)


def _ce_from_weights(logits, weights):
    """logits: (N, C, HW_lowres) float; weights: (N, C, HW_lowres) f32 counts."""
    _, _, hw = logits.shape
    if hw < 128:
        pad = 128 - hw
        logits = jnp.pad(logits, ((0, 0), (0, 0), (0, pad)))
        weights = jnp.pad(weights, ((0, 0), (0, 0), (0, pad)))
    return _run_ce(_ce_weighted_kernel, logits, weights, hw_valid=hw,
                   cnt_dtype=jnp.float32)


def _nearest_resize_weights(label, num_classes, fh, fw):
    """Per-source-pixel, per-class counts of non-ignored label pixels.

    label: (N, H_out, W_out) with H_out = fh*H_in, W_out = fw*W_in; nearest
    upsampling by integer factors maps output pixel (r, c) to source pixel
    (r // fh, c // fw).  Out-of-range labels (incl. ignore_index=255) never
    match a class, so they contribute neither loss nor count.  The compare is
    fused into the reduction by XLA, so only the small (N, C, H_in, W_in)
    result touches HBM.
    """
    n, h_out, w_out = label.shape
    h_in, w_in = h_out // fh, w_out // fw
    lab = label.astype(jnp.int32).reshape(n, 1, h_in, fh, w_in, fw)
    cls = jnp.arange(num_classes, dtype=jnp.int32).reshape(1, -1, 1, 1, 1, 1)
    w = jnp.sum((lab == cls).astype(jnp.float32), axis=(3, 5))
    return w.reshape(n, num_classes, h_in * w_in)


def _nearest_resize_flat(x, out_hw):
    """F.interpolate(mode='nearest') to out_hw, flattened to (N, C, H*W).

    Fallback for non-integer scale factors only (materializes the gather).
    """
    n, c, h_in, w_in = x.shape
    h_out, w_out = out_hw
    ri = (jnp.arange(h_out) * h_in) // h_out
    ci = (jnp.arange(w_out) * w_in) // w_out
    flat = (ri[:, None] * w_in + ci[None, :]).reshape(-1)
    return jnp.take(x.reshape(n, c, h_in * w_in), flat, axis=2)


@jax.jit
def segsem_crossentropy_loss(output, label):
    """output: (N, C, H', W') float logits; label: (N, H, W) ints, 255 = ignore."""
    n, c = output.shape[0], output.shape[1]
    h_out, w_out = label.shape[-2], label.shape[-1]
    h_in, w_in = output.shape[-2], output.shape[-1]

    if (h_in, w_in) == (h_out, w_out):
        return _ce_from_labels(output.reshape(n, c, h_out * w_out),
                               label.reshape(n, 1, h_out * w_out))

    if (h_out % h_in == 0 and w_out % w_in == 0
            and h_out >= h_in and w_out >= w_in):
        # Fused nearest-neighbor upsample: contract the labels to low-res
        # per-class counts instead of expanding the logits to label resolution.
        fh, fw = h_out // h_in, w_out // w_in
        weights = _nearest_resize_weights(label, c, fh, fw)
        return _ce_from_weights(output.reshape(n, c, h_in * w_in), weights)

    # TODO(synk): fuse the general (non-integer-factor / downsampling) nearest
    # resize into the kernel as well; fall back to a materialized gather for now.
    logits = _nearest_resize_flat(output, (h_out, w_out))
    return _ce_from_labels(logits, label.reshape(n, 1, h_out * w_out))


# -------------------------------- reference --------------------------------

def _reference_loss(output, label):
    h, w = label.shape[-2], label.shape[-1]
    if output.shape[-2:] != (h, w):
        logits = _nearest_resize_flat(output, (h, w))
    else:
        n0, c0 = output.shape[0], output.shape[1]
        logits = output.reshape(n0, c0, h * w)
    n0, c0, _ = logits.shape
    x = jnp.transpose(logits, (0, 2, 1)).reshape(-1, c0).astype(jnp.float32)
    lbl = label.reshape(-1).astype(jnp.int32)
    lse = jax.scipy.special.logsumexp(x, axis=-1)
    valid = lbl != IGNORE_INDEX
    safe = jnp.where(valid, lbl, 0)
    tgt = jnp.take_along_axis(x, safe[:, None], axis=-1)[:, 0]
    per = jnp.where(valid, lse - tgt, 0.0)
    return jnp.sum(per) / jnp.sum(valid.astype(jnp.float32))


if __name__ == "__main__":
    key = jax.random.PRNGKey(0)
    k1, k2, k3, k4, k5, k6, k7 = jax.random.split(key, 7)

    N, C, H, W = 2, 4, 16, 16

    label = jax.random.randint(k2, (N, H, W), 0, C, dtype=jnp.int32)
    ignore_mask = jax.random.bernoulli(k3, p=0.2, shape=(N, H, W))
    label = jnp.where(ignore_mask, IGNORE_INDEX, label)

    # case 1: f32 logits already at label resolution
    logits = jax.random.normal(k1, (N, C, H, W), dtype=jnp.float32)
    loss1 = segsem_crossentropy_loss(logits, label)
    jax.block_until_ready(loss1)
    ref1 = _reference_loss(logits, label)
    assert jnp.allclose(loss1, ref1, atol=1e-5, rtol=1e-5), (loss1, ref1)

    # case 2: half-resolution logits -> fused nearest-upsample (weighted) path
    logits_small = jax.random.normal(k4, (N, C, H // 2, W // 2), dtype=jnp.float32)
    loss2 = segsem_crossentropy_loss(logits_small, label)
    jax.block_until_ready(loss2)
    ref2 = _reference_loss(logits_small, label)
    assert jnp.allclose(loss2, ref2, atol=1e-5, rtol=1e-5), (loss2, ref2)

    # case 3: bf16 logits stay bf16 on the wire (kernel casts in VMEM)
    logits_bf16 = jax.random.normal(k5, (N, C, H, W), dtype=jnp.bfloat16)
    loss3 = segsem_crossentropy_loss(logits_bf16, label)
    jax.block_until_ready(loss3)
    ref3 = _reference_loss(logits_bf16, label)
    assert jnp.allclose(loss3, ref3, atol=1e-4, rtol=1e-4), (loss3, ref3)

    # case 4: ragged pixel count (H*W not a multiple of 128) -> partial trailing
    # block + in-kernel extent mask, no full-tensor padding
    H4, W4, C4 = 20, 24, 5
    logits4 = jax.random.normal(k6, (N, C4, H4, W4), dtype=jnp.float32)
    label4 = jax.random.randint(k7, (N, H4, W4), 0, C4, dtype=jnp.int32)
    label4 = jnp.where(jax.random.bernoulli(k3, p=0.15, shape=(N, H4, W4)),
                       IGNORE_INDEX, label4)
    loss4 = segsem_crossentropy_loss(logits4, label4)
    jax.block_until_ready(loss4)
    ref4 = _reference_loss(logits4, label4)
    assert jnp.allclose(loss4, ref4, atol=1e-5, rtol=1e-5), (loss4, ref4)

    print("KERNEL_OK")
</pallas_src>

<mosaic_0001>
module attributes {stable_mosaic.version = 11 : i64} {
  func.func @_ce_label_kernel(%arg0: i32, %arg1: i32, %arg2: i32, %arg3: memref<1x4x256xf32, #tpu.memory_space<vmem>>, %arg4: memref<1x1x256xi32, #tpu.memory_space<vmem>>, %arg5: memref<1x1x1x256xf32, #tpu.memory_space<vmem>>, %arg6: memref<1x1x1x256xi32, #tpu.memory_space<vmem>>) attributes {dimension_semantics = [#tpu.dimension_semantics<parallel>, #tpu.dimension_semantics<parallel>, #tpu.dimension_semantics<arbitrary>], iteration_bounds = array<i64: 2, 1, 1>, scalar_prefetch = 0 : i64, scratch_operands = 0 : i64, tpu.core_type = #tpu.core_type<tc>, window_params = [{transform_indices = @transform_0, window_bounds = array<i64: 1, 4, 256>}, {transform_indices = @transform_1, window_bounds = array<i64: 1, 1, 256>}, {transform_indices = @transform_2, window_bounds = array<i64: 1, 1, 1, 256>}, {transform_indices = @transform_3, window_bounds = array<i64: 1, 1, 1, 256>}]} {
    %c0_i32 = arith.constant 0 : i32
    %0 = arith.cmpi eq, %arg2, %c0_i32 : i32
    %1 = arith.extui %0 : i1 to i32
    %c0_i32_0 = arith.constant 0 : i32
    %2 = arith.cmpi ne, %1, %c0_i32_0 : i32
    scf.if %2 {
      %cst_27 = arith.constant 0.000000e+00 : f32
      %47 = vector.broadcast %cst_27 : f32 to vector<1x1x1x256xf32>
      %c0_28 = arith.constant 0 : index
      %c0_29 = arith.constant 0 : index
      %c0_30 = arith.constant 0 : index
      %c0_31 = arith.constant 0 : index
      %48 = vector.load %arg5[%c0_28, %c0_29, %c0_30, %c0_31] : memref<1x1x1x256xf32, #tpu.memory_space<vmem>>, vector<1x1x1x256xf32>
      tpu.vector_store %arg5[%c0_28, %c0_29, %c0_30, %c0_31], %47 {strides = array<i32>} : memref<1x1x1x256xf32, #tpu.memory_space<vmem>>, vector<1x1x1x256xf32>,
      %c0_i32_32 = arith.constant 0 : i32
      %49 = vector.broadcast %c0_i32_32 : i32 to vector<1x1x1x256xi32>
      %c0_33 = arith.constant 0 : index
      %c0_34 = arith.constant 0 : index
      %c0_35 = arith.constant 0 : index
      %c0_36 = arith.constant 0 : index
      %50 = vector.load %arg6[%c0_33, %c0_34, %c0_35, %c0_36] : memref<1x1x1x256xi32, #tpu.memory_space<vmem>>, vector<1x1x1x256xi32>
      tpu.vector_store %arg6[%c0_33, %c0_34, %c0_35, %c0_36], %49 {strides = array<i32>} : memref<1x1x1x256xi32, #tpu.memory_space<vmem>>, vector<1x1x1x256xi32>,
    } else {
    }
    %c0 = arith.constant 0 : index
    %c0_1 = arith.constant 0 : index
    %c0_2 = arith.constant 0 : index
    %3 = vector.load %arg3[%c0, %c0_1, %c0_2] : memref<1x4x256xf32, #tpu.memory_space<vmem>>, vector<1x4x256xf32>
    %4 = vector.shape_cast %3 : vector<1x4x256xf32> to vector<4x256xf32>
    %c0_3 = arith.constant 0 : index
    %c0_4 = arith.constant 0 : index
    %c0_5 = arith.constant 0 : index
    %5 = vector.load %arg4[%c0_3, %c0_4, %c0_5] : memref<1x1x256xi32, #tpu.memory_space<vmem>>, vector<1x1x256xi32>
    %6 = vector.shape_cast %5 : vector<1x1x256xi32> to vector<1x256xi32>
    %7 = tpu.iota {dimensions = array<i32: 0>} : vector<4x256xi32>
    %8 = vector.broadcast %6 : vector<1x256xi32> to vector<4x256xi32>
    %9 = arith.cmpi eq, %7, %8 : vector<4x256xi32>
    %cst = arith.constant dense<0xFF800000> : vector<256xf32>
    %10 = vector.multi_reduction <maximumf>, %4, %cst [0] : vector<4x256xf32> to vector<256xf32>
    %11 = vector.shape_cast %10 : vector<256xf32> to vector<1x256xf32>
    %c0_i32_6 = arith.constant 0 : i32
    %12 = arith.sitofp %c0_i32_6 : i32 to f32
    %13 = vector.broadcast %12 : f32 to vector<4x256xf32>
    %14 = arith.select %9, %4, %13 : vector<4x256xi1>, vector<4x256xf32>
    %cst_7 = arith.constant dense<0.000000e+00> : vector<256xf32>
    %15 = vector.multi_reduction <add>, %14, %cst_7 [0] : vector<4x256xf32> to vector<256xf32>
    %16 = vector.shape_cast %15 : vector<256xf32> to vector<1x256xf32>
    %17 = vector.broadcast %11 : vector<1x256xf32> to vector<4x256xf32>
    %18 = arith.subf %4, %17 : vector<4x256xf32>
    %19 = math.exp %18 : vector<4x256xf32>
    %cst_8 = arith.constant dense<0.000000e+00> : vector<256xf32>
    %20 = vector.multi_reduction <add>, %19, %cst_8 [0] : vector<4x256xf32> to vector<256xf32>
    %21 = vector.shape_cast %20 : vector<256xf32> to vector<1x256xf32>
    %22 = math.log %21 : vector<1x256xf32>
    %23 = arith.addf %11, %22 : vector<1x256xf32>
    %24 = tpu.iota {dimensions = array<i32: 1>} : vector<1x256xi32>
    %c1_i32 = arith.constant 1 : i32
    %25 = arith.muli %arg1, %c1_i32 : i32
    %26 = arith.addi %25, %arg2 : i32
    %c256_i32 = arith.constant 256 : i32
    %27 = arith.muli %26, %c256_i32 : i32
    %28 = vector.broadcast %27 : i32 to vector<1x256xi32>
    %29 = arith.addi %28, %24 : vector<1x256xi32>
    %c256_i32_9 = arith.constant 256 : i32
    %30 = vector.broadcast %c256_i32_9 : i32 to vector<1x256xi32>
    %31 = arith.cmpi slt, %29, %30 : vector<1x256xi32>
    %c255_i32 = arith.constant 255 : i32
    %32 = vector.broadcast %c255_i32 : i32 to vector<1x256xi32>
    %33 = arith.cmpi ne, %6, %32 : vector<1x256xi32>
    %34 = arith.andi %33, %31 : vector<1x256xi1>
    %35 = arith.subf %23, %16 : vector<1x256xf32>
    %cst_10 = arith.constant 0.000000e+00 : f32
    %36 = vector.broadcast %cst_10 : f32 to vector<1x256xf32>
    %37 = arith.select %34, %35, %36 : vector<1x256xi1>, vector<1x256xf32>
    %c0_11 = arith.constant 0 : index
    %c0_12 = arith.constant 0 : index
    %c0_13 = arith.constant 0 : index
    %c0_14 = arith.constant 0 : index
    %38 = vector.load %arg5[%c0_11, %c0_12, %c0_13, %c0_14] : memref<1x1x1x256xf32, #tpu.memory_space<vmem>>, vector<1x1x1x256xf32>
    %39 = vector.shape_cast %37 : vector<1x256xf32> to vector<1x1x1x256xf32>
    %40 = arith.addf %38, %39 : vector<1x1x1x256xf32>
    %c0_15 = arith.constant 0 : index
    %c0_16 = arith.constant 0 : index
    %c0_17 = arith.constant 0 : index
    %c0_18 = arith.constant 0 : index
    %41 = vector.load %arg5[%c0_15, %c0_16, %c0_17, %c0_18] : memref<1x1x1x256xf32, #tpu.memory_space<vmem>>, vector<1x1x1x256xf32>
    tpu.vector_store %arg5[%c0_15, %c0_16, %c0_17, %c0_18], %40 {strides = array<i32>} : memref<1x1x1x256xf32, #tpu.memory_space<vmem>>, vector<1x1x1x256xf32>,
    %c0_19 = arith.constant 0 : index
    %c0_20 = arith.constant 0 : index
    %c0_21 = arith.constant 0 : index
    %c0_22 = arith.constant 0 : index
    %42 = vector.load %arg6[%c0_19, %c0_20, %c0_21, %c0_22] : memref<1x1x1x256xi32, #tpu.memory_space<vmem>>, vector<1x1x1x256xi32>
    %43 = arith.extui %34 : vector<1x256xi1> to vector<1x256xi32>
    %44 = vector.shape_cast %43 : vector<1x256xi32> to vector<1x1x1x256xi32>
    %45 = arith.addi %42, %44 : vector<1x1x1x256xi32>
    %c0_23 = arith.constant 0 : index
    %c0_24 = arith.constant 0 : index
    %c0_25 = arith.constant 0 : index
    %c0_26 = arith.constant 0 : index
    %46 = vector.load %arg6[%c0_23, %c0_24, %c0_25, %c0_26] : memref<1x1x1x256xi32, #tpu.memory_space<vmem>>, vector<1x1x1x256xi32>
    tpu.vector_store %arg6[%c0_23, %c0_24, %c0_25, %c0_26], %45 {strides = array<i32>} : memref<1x1x1x256xi32, #tpu.memory_space<vmem>>, vector<1x1x1x256xi32>,
    return
  }
  func.func @transform_0(%arg0: i32, %arg1: i32, %arg2: i32) -> (i32, i32, i32) {
    %c1_i32 = arith.constant 1 : i32
    %0 = arith.muli %arg1, %c1_i32 : i32
    %1 = arith.addi %0, %arg2 : i32
    %c0_i32 = arith.constant 0 : i32
    %c0_i32_0 = arith.constant 0 : i32
    return %arg0, %c0_i32, %1 : i32, i32, i32
  }
  func.func @transform_1(%arg0: i32, %arg1: i32, %arg2: i32) -> (i32, i32, i32) {
    %c1_i32 = arith.constant 1 : i32
    %0 = arith.muli %arg1, %c1_i32 : i32
    %1 = arith.addi %0, %arg2 : i32
    %c0_i32 = arith.constant 0 : i32
    %c0_i32_0 = arith.constant 0 : i32
    return %arg0, %c0_i32, %1 : i32, i32, i32
  }
  func.func @transform_2(%arg0: i32, %arg1: i32, %arg2: i32) -> (i32, i32, i32, i32) {
    %c0_i32 = arith.constant 0 : i32
    %c0_i32_0 = arith.constant 0 : i32
    %c0_i32_1 = arith.constant 0 : i32
    return %arg0, %arg1, %c0_i32, %c0_i32_0 : i32, i32, i32, i32
  }
  func.func @transform_3(%arg0: i32, %arg1: i32, %arg2: i32) -> (i32, i32, i32, i32) {
    %c0_i32 = arith.constant 0 : i32
    %c0_i32_0 = arith.constant 0 : i32
    %c0_i32_1 = arith.constant 0 : i32
    return %arg0, %arg1, %c0_i32, %c0_i32_0 : i32, i32, i32, i32
  }
}

</mosaic_0001>

<bundles_post_ra>
// kernel: segsem_crossentropy_loss.1
= control target key start
LH: loop header
LB: loop body
LE: loop exit
PB: predicated region body
PF: predicated region fallthrough
CT: control target
= control target key end

     0   :  { %s676_s12 = smov 0   ;;  %s678_s13 = smov 0   ;;  %s752_s0 = inlined_call_operand.vmem [shape: f32[2,4,256], index: 0, kind: input, shape index: {}]   ;;  %s753_s1 = inlined_call_operand.vmem [shape: s32[2,1,256], index: 1, kind: input, shape index: {}]   ;;  %s754_s2 = inlined_call_operand.vmem [shape: f32[2,1,1,256], index: 2, kind: output, shape index: {0}]   ;;  %s755_s3 = inlined_call_operand.vmem [shape: s32[2,1,1,256], index: 3, kind: output, shape index: {1}]  }
   0x1   :  { %s680_s14 = smov 0  }
   0x2 LB: > { %s33_s15 = sadd.s32 1, %s646_s13  ;;  %p584_p0 = scmp.ge.s32.totalorder %s650_s14, 1  ;;  %s650_s14 = sphi %s680_s14, %s14_s14   ;;  %s646_s13 = sphi %s678_s13, %s761_s13   ;;  %s642_s12 = sphi %s676_s12, %s760_s12  }
   0x3   : > { %p35_p1 = scmp.ge.s32.totalorder %s33_s15, 2  ;;  %p194_p2 = scmp.lt.s32.totalorder %s650_s14, 3 }
   0x5   : > { %s763_s15 = smov (%p35_p1, %s33_s15), 0  ;;  %p195_p3 = pnand %p584_p0, %p194_p2 }
   0x6   : > { %p245_p4 = scmp.lt.s32.totalorder (!%p195_p3), %s642_s12, 1 }
   0x7   : > { %198 = sbr.rel (%p195_p3) target bundleno = 96 (0x60), region = 28 }
   0xc   : > { %v286_v0 = vlaneseq  ;;  %s765_s12 = smov (!%p245_p4, %s642_s12), 1  ;;  %v652_v1 = vmov 1966171168   ;;  %vm309_vm0 = vcmask 1043456   ;;  %v653_v5 = vmov 1  }
   0xd   : > { %v385_v2 = vunpack.c.l.s4 %v652_v1  ;;  %s592_s16 = sshll.u32 %s765_s12, 3  ;;  %s587_s17 = sshll.u32 %s765_s12, 1  ;;  %v383_v6 = vcombine.low %v653_v5, %v653_v5  ;;  %v654_v10 = vmov 0.0   ;;  %v655_v13 = vmov 0  }
   0xe   : > { %vm694_vm1 = vcmp.lt.s32.totalorder %v286_v0, 256  ;;  %v295_v4 = vshrl.u32 %v286_v0, 7  ;;  %s252_s20 = scalar_lea.vmem %s752_s0, %s592_s16  ;;  %s704_s23 = scalar_lea.vmem %s754_s2, %s587_s17 }
   0xf   : > { %v386_v7 = vunpack.c.0.s8 %v385_v2  ;;  %v292_v8 = vld [vmem:[%s252_s20] sm:$0xff]  ;;  %s281_s26 = scalar_lea.vmem %s755_s3, %s587_s17  ;;  %s263_s29 = scalar_lea.vmem %s753_s1, %s587_s17  ;;  %290 = vst.msk [vmem:[%s704_s23] sm:$0x3] %vm694_vm1, %v654_v10 }
  0x10   : > { %v307_v11 = vcombine.high %v292_v8, %v292_v8  ;;  %v310_v12 = vsel %vm309_vm0, %v292_v8, -inf  ;;  %291 = vst.msk [vmem:[%s281_s26] sm:$0x3] %vm694_vm1, %v655_v13  ;;  %v293_v17 = vld [vmem:[%s263_s29] sm:$0x3]  ;;  %v298_v37 = vsub.s32 0, %v295_v4 }
  0x11   : > { %v709_v9 = vsub.s32 %v386_v7, %v295_v4  ;;  %v311_v14 = vrot.slane %v310_v12, 4  ;;  %vm380_vm2 = vcmp.ne.s32.totalorder %v293_v17, 255  ;;  %v302_v38 = vsub.s32 1, %v295_v4 }
  0x12   : > { %v317_v16 = vsel %vm309_vm0, %v307_v11, -inf  ;;  %v299_v39 = vrot.slane %v293_v17, %v298_v37 }
  0x13   : > { %v390_v15 = vrot.slane %v383_v6, %v709_v9  ;;  %v312_v18 = vmax.f32 %v310_v12, %v311_v14  ;;  %v318_v19 = vrot.slane %v317_v16, 4  ;;  %v303_v40 = vrot.slane %v293_v17, %v302_v38 }
  0x14   : > { %vm304_vm5 = vcmp.eq.s32.totalorder %v295_v4, %v299_v39 }
  0x15   : > { %v397_v20 = vrot.slane %v390_v15, %v709_v9  ;;  %v313_v21 = vrot.slane %v312_v18, 2  ;;  %v319_v22 = vmax.f32 %v317_v16, %v318_v19  ;;  %vm305_vm6 = vcmp.eq.s32.totalorder %v295_v4, %v303_v40 }
  0x16   : > { %v324_v44 = vsel %vm304_vm5, %v292_v8, 0.0  ;;  %v325_v47 = vsel %vm305_vm6, %v307_v11, 0.0 }
  0x17   : > { %vm398_vm3 = vcmp.ne.s32.totalorder %v397_v20, 0  ;;  %v314_v23 = vmax.f32 %v312_v18, %v313_v21  ;;  %v320_v24 = vrot.slane %v319_v22, 2  ;;  %v428_v26 = vld [vmem:[%s281_s26] sm:$0x3]  ;;  %v326_v50 = vsel %vm309_vm0, %v324_v44, 0.0 }
  0x18   : > { %vm723_vm4 = vmand %vm380_vm2, %vm398_vm3  ;;  %v333_v53 = vsel %vm309_vm0, %v325_v47, 0.0  ;;  %v327_v54 = vrot.slane %v326_v50, 4  ;;  %v421_v21 = vld [vmem:[%s704_s23] sm:$0x3] }
  0x19   : > { %v429_v27 = vsel %vm723_vm4, 1, %v655_v13  ;;  %v315_v28 = vrot.slane %v314_v23, 1  ;;  %v321_v29 = vmax.f32 %v319_v22, %v320_v24  ;;  %v334_v57 = vrot.slane %v333_v53, 4 }
  0x1a   : > { %v430_v30 = vadd.s32 %v429_v27, %v428_v26  ;;  %v328_v60 = vadd.f32 %v327_v54, %v326_v50 }
  0x1b   : > { %v316_v31 = vmax.f32 %v314_v23, %v315_v28  ;;  %v322_v32 = vrot.slane %v321_v29, 1  ;;  %v335_v63 = vadd.f32 %v334_v57, %v333_v53 }
  0x1c   : > { %431 = vst.msk [vmem:[%s281_s26] sm:$0x3] %vm694_vm1, %v430_v30  ;;  %v329_v1 = vrot.slane %v328_v60, 2 }
  0x1d   : > { %v323_v33 = vmax.f32 %v321_v29, %v322_v32  ;;  %v336_v2 = vrot.slane %v335_v63, 2 }
  0x1e   : > { %v330_v4 = vadd.f32 %v329_v1, %v328_v60 }
  0x1f   : > { %v342_v34 = vcombine.low %v316_v31, %v323_v33  ;;  %v337_v5 = vadd.f32 %v336_v2, %v335_v63 }
  0x20   : > { %v331_v6 = vrot.slane %v330_v4, 1 }
  0x21   : > { %v344_v35 = vsub.f32 %v292_v8, %v342_v34  ;;  %v338_v7 = vrot.slane %v337_v5, 1 }
  0x22   : > { %v332_v10 = vadd.f32 %v331_v6, %v330_v4 }
  0x23   : > { %v345_v36 = vmul.f32 1.442695, %v344_v35  ;;  %v339_v13 = vadd.f32 %v338_v7, %v337_v5 }
  0x25   : > { %622 = vpow2.f32 %v345_v36 }
  0x32   : > { %v623_v41 = vpop.eup %622 }
  0x33   : > { %v348_v42 = vcombine.high %v623_v41, %v623_v41  ;;  %v350_v43 = vsel %vm309_vm0, %v623_v41, 0.0 }
  0x34   : > { %v351_v45 = vrot.slane %v350_v43, 4 }
  0x35   : > { %v357_v46 = vsel %vm309_vm0, %v348_v42, 0.0 }
  0x36   : > { %v352_v48 = vadd.f32 %v351_v45, %v350_v43  ;;  %v358_v49 = vrot.slane %v357_v46, 4 }
  0x38   : > { %v353_v51 = vrot.slane %v352_v48, 2  ;;  %v359_v52 = vadd.f32 %v358_v49, %v357_v46 }
  0x3a   : > { %v354_v55 = vadd.f32 %v353_v51, %v352_v48  ;;  %v360_v56 = vrot.slane %v359_v52, 2 }
  0x3c   : > { %v355_v58 = vrot.slane %v354_v55, 1  ;;  %v361_v59 = vadd.f32 %v360_v56, %v359_v52 }
  0x3e   : > { %v356_v61 = vadd.f32 %v355_v58, %v354_v55  ;;  %v362_v62 = vrot.slane %v361_v59, 1 }
  0x40   : > { %v363_v0 = vadd.f32 %v362_v62, %v361_v59  ;;  %624 = vlog2.f32 %v356_v61 }
  0x42   : > { %626 = vlog2.f32 %v363_v0 }
  0x4d   : > { %v625_v8 = vpop.eup %624 }
  0x4e   : > { %v365_v11 = vmul.f32 0.6931472, %v625_v8 }
  0x4f   : > { %v627_v12 = vpop.eup %626 }
  0x50   : > { %v367_v14 = vmul.f32 0.6931472, %v627_v12  ;;  %v368_v15 = vadd.f32 %v365_v11, %v316_v31 }
  0x52   : > { %v369_v16 = vadd.f32 %v367_v14, %v323_v33  ;;  %v400_v17 = vsub.f32 %v368_v15, %v332_v10 }
  0x54   : > { %v401_v18 = vsub.f32 %v369_v16, %v339_v13 }
  0x56   : > { %v404_v19 = vcombine.low %v400_v17, %v401_v18 }
  0x58   : > { %v411_v20 = vrot.slane %v404_v19, %v709_v9 }
  0x5a   : > { %v418_v22 = vrot.slane %v411_v20, %v709_v9 }
  0x5c   : > { %v420_v23 = vsel %vm723_vm4, %v418_v22, 0.0 }
  0x5d   : > { %v422_v24 = vadd.f32 %v421_v21, %v420_v23 }
  0x5f   : > { %427 = vst.msk [vmem:[%s704_s23] sm:$0x3] %vm694_vm1, %v422_v24 }
  0x60 PF: > { %s14_s14 = sadd.s32 1, %s650_s14   ;;  %s760_s12 = smov %s646_s13 }
  0x61   : > { %p11_p5 = scmp.ge.s32.totalorder %s14_s14, 4   ;;  %s761_s13 = smov %s763_s15 }
  0x63   :  { %13 = sbr.rel (!%p11_p5) target bundleno = 2 (0x2), region = 77 }

</bundles_post_ra>
